<compile_context>
chip_gen: v5e
topology: v5e:2x2
jax: 0.10.0
libtpu: 0.0.40
codegen_flags: <defaults>
</compile_context>

<pallas_src>
import functools

import jax
import jax.numpy as jnp
from jax.experimental import pallas as pl
from jax.experimental.pallas import tpu as pltpu


# ---------------------------------------------------------------------------
# Fused kernel: y = actN(... act1(x @ W1 + b1) ... @ WN + bN)
# ---------------------------------------------------------------------------
def _make_fused_kernel(activations):
    activations = tuple(activations)

    def kernel(x_ref, *refs):
        # refs = (w1, b1, w2, b2, ..., wN, bN, out)
        o_ref = refs[-1]
        h = x_ref[...]  # bf16 (tm, K) -- goes straight to the MXU
        for li, act in enumerate(activations):
            w_ref = refs[2 * li]
            b_ref = refs[2 * li + 1]
            # bf16 MXU matmul, f32 accumulation.
            h = jnp.dot(
                h.astype(w_ref.dtype),
                w_ref[...],
                preferred_element_type=jnp.float32,
            )
            # Bias add + activation in f32 (VPU / EUP).
            h = h + b_ref[...]
            if act == "relu":
                h = jnp.maximum(h, 0.0)
            elif act == "sigmoid":
                h = jax.nn.sigmoid(h)
            elif act is not None:
                raise ValueError(f"unknown activation: {act}")
        o_ref[...] = h.astype(o_ref.dtype)

    return kernel


# ---------------------------------------------------------------------------
# Tiling / VMEM helpers
# ---------------------------------------------------------------------------
def _round_up(x, m):
    return ((x + m - 1) // m) * m


def _choose_tm(M, tm_max=2048):
    """Pick the batch tile.

    * Big tiles for big batches (kernel is HBM-bound; fewer grid steps).
    * >=2 grid blocks whenever M > 8 so both v7x TensorCores are used.
    * Sublane-aligned (multiple of 8) unless the tile equals the full batch.
    * pl.cdiv-based grids handle the ragged last block, so M need not divide.
    """
    if M <= 8:
        return max(M, 1)  # single block == full (tiny) batch
    half = pl.cdiv(M, 2)
    return max(8, min(tm_max, _round_up(half, 8)))


def _vmem_capacity_bytes():
    try:
        info = pltpu.get_tpu_info()
        cap = getattr(info, "vmem_capacity_bytes", None)
        if cap:
            return int(cap)
    except Exception:
        pass
    return 64 << 20  # conservative floor (v7x has 64 MiB per TensorCore)


def _vmem_limit_bytes(tm, in_dim, layer_dims, out_bytes):
    """Estimate VMEM needs (double-buffered I/O + weights + intermediates)."""
    out_dim = layer_dims[-1][1]
    io = tm * in_dim * 2 + tm * out_dim * out_bytes          # bf16 x + out tile
    wb = sum(fi * fo * 2 + max(fo, 128) * 4 for fi, fo in layer_dims)
    inter = sum(tm * fo * 4 for _, fo in layer_dims)          # live f32 temps
    est = 2 * (io + wb) + inter + (2 << 20)                   # 2x pipelining + slack
    cap = int(0.75 * _vmem_capacity_bytes())                  # generation-aware cap
    return int(max(min(est, cap), 4 << 20))


# ---------------------------------------------------------------------------
# pallas_call wrapper
# ---------------------------------------------------------------------------
def fused_decoder_forward(x, params, activations, *, out_dtype=jnp.float32,
                          tm_max=2048):
    """x: (M, K) bf16; params: tuple of (W (K_l, N_l) bf16, b (N_l,) f32)."""
    M, K = x.shape
    layer_dims = tuple((w.shape[0], w.shape[1]) for (w, _) in params)
    assert layer_dims[0][0] == K
    out_dim = layer_dims[-1][1]

    tm = _choose_tm(M, tm_max)
    grid = (pl.cdiv(M, tm),)  # ragged last block is padded by Pallas

    kernel = _make_fused_kernel(activations)

    in_specs = [pl.BlockSpec((tm, K), lambda i: (i, 0))]
    flat_inputs = [x]
    for (w, b) in params:
        k_l, n_l = w.shape
        # Constant index maps -> weights/biases stay VMEM-resident across steps.
        in_specs.append(pl.BlockSpec((k_l, n_l), lambda i: (0, 0)))
        in_specs.append(pl.BlockSpec((1, n_l), lambda i: (0, 0)))
        flat_inputs.append(w)
        flat_inputs.append(b.reshape(1, n_l))

    out_dtype = jnp.dtype(out_dtype)
    return pl.pallas_call(
        kernel,
        out_shape=jax.ShapeDtypeStruct((M, out_dim), out_dtype),
        grid=grid,
        in_specs=in_specs,
        out_specs=pl.BlockSpec((tm, out_dim), lambda i: (i, 0)),
        compiler_params=pltpu.CompilerParams(
            dimension_semantics=("parallel",),
            vmem_limit_bytes=_vmem_limit_bytes(
                tm, K, layer_dims, out_dtype.itemsize),
        ),
    )(*flat_inputs)


@functools.partial(jax.jit, static_argnums=(2, 3))
def _decoder_apply(code, params, activations, out_dtype):
    # Cast once here (one fused XLA convert): halves x DMA, removes the
    # per-tile layer-1 f32->bf16 pack inside the kernel.
    return fused_decoder_forward(
        code.astype(jnp.bfloat16), params, activations, out_dtype=out_dtype)


# ---------------------------------------------------------------------------
# Module-equivalent wrapper
# ---------------------------------------------------------------------------
class Decoder:
    """JAX/Pallas equivalent of the PyTorch Decoder(nn.Sequential(*layers))."""

    def __init__(self, layer_dims, activations, key, out_dtype=jnp.float32):
        # layer_dims: [(in0, out0), (in1, out1), ...]
        # activations: one of {"relu", "sigmoid", None} per layer.
        # NOTE: hidden widths that are multiples of 128 keep intermediates
        # lane-dense if this decoder is ever scaled up.
        assert len(layer_dims) == len(activations)
        self.activations = tuple(activations)
        self.out_dtype = jnp.dtype(out_dtype)
        params = []
        for (fan_in, fan_out) in layer_dims:
            key, kw, kb = jax.random.split(key, 3)
            # PyTorch nn.Linear default init: U(-1/sqrt(fan_in), 1/sqrt(fan_in))
            bound = 1.0 / (fan_in ** 0.5)
            w_torch = jax.random.uniform(
                kw, (fan_out, fan_in), jnp.float32, -bound, bound)
            b = jax.random.uniform(kb, (fan_out,), jnp.float32, -bound, bound)
            # Pre-transpose to (in, out) so the kernel does x @ W; store bf16.
            params.append((jnp.transpose(w_torch).astype(jnp.bfloat16), b))
        self.params = tuple(params)

    def __call__(self, code):
        return _decoder_apply(code, self.params, self.activations,
                              self.out_dtype)

    def reference(self, code):
        """Pure-JAX f32 reference (same bf16-stored weights) for testing."""
        h = code.astype(jnp.float32)
        for (w, b), act in zip(self.params, self.activations):
            h = h @ w.astype(jnp.float32) + b
            if act == "relu":
                h = jnp.maximum(h, 0.0)
            elif act == "sigmoid":
                h = jax.nn.sigmoid(h)
        return h.astype(self.out_dtype)


if __name__ == "__main__":
    key = jax.random.PRNGKey(0)
    key, k_in, k_big, k_params = jax.random.split(key, 4)

    decoder = Decoder(
        layer_dims=[(32, 64), (64, 128), (128, 256)],
        activations=["relu", "relu", "sigmoid"],
        key=k_params,
    )

    # Small demo batch (latent codes of the autoencoder).
    batch, latent = 8, 32
    code = jax.random.normal(k_in, (batch, latent), dtype=jnp.float32)
    out = jax.block_until_ready(decoder(code))
    assert out.shape == (batch, 256), out.shape
    assert out.dtype == jnp.float32
    assert bool(jnp.all(jnp.isfinite(out)))
    # Final layer is a sigmoid -> outputs must lie in [0, 1].
    assert bool(jnp.all((out >= 0.0) & (out <= 1.0)))
    # bf16 matmul path vs f32 reference: small tolerance (review concern #1).
    ref = decoder.reference(code)
    assert float(jnp.max(jnp.abs(out - ref))) < 5e-2

    # Larger ragged batch: exercises the cdiv-tiled grid (2 parallel blocks,
    # padded tail) that the performance path relies on.
    big = jax.random.normal(k_big, (300, latent), dtype=jnp.float32)
    out_big = jax.block_until_ready(decoder(big))
    ref_big = decoder.reference(big)
    assert out_big.shape == (300, 256)
    assert bool(jnp.all(jnp.isfinite(out_big)))
    assert float(jnp.max(jnp.abs(out_big - ref_big))) < 5e-2

    print("KERNEL_OK")
</pallas_src>

<mosaic_0001>
module attributes {stable_mosaic.version = 11 : i64} {
  func.func @kernel(%arg0: i32, %arg1: memref<8x32xbf16, #tpu.memory_space<vmem>>, %arg2: memref<32x64xbf16, #tpu.memory_space<vmem>>, %arg3: memref<1x64xf32, #tpu.memory_space<vmem>>, %arg4: memref<64x128xbf16, #tpu.memory_space<vmem>>, %arg5: memref<1x128xf32, #tpu.memory_space<vmem>>, %arg6: memref<128x256xbf16, #tpu.memory_space<vmem>>, %arg7: memref<1x256xf32, #tpu.memory_space<vmem>>, %arg8: memref<8x256xf32, #tpu.memory_space<vmem>>) attributes {dimension_semantics = [#tpu.dimension_semantics<parallel>], iteration_bounds = array<i64: 1>, scalar_prefetch = 0 : i64, scratch_operands = 0 : i64, tpu.core_type = #tpu.core_type<tc>, window_params = [{transform_indices = @transform_0, window_bounds = array<i64: 8, 32>}, {pipeline_mode = #tpu.pipeline_mode<synchronous>, transform_indices = @transform_1, window_bounds = array<i64: 32, 64>}, {pipeline_mode = #tpu.pipeline_mode<synchronous>, transform_indices = @transform_2, window_bounds = array<i64: 1, 64>}, {pipeline_mode = #tpu.pipeline_mode<synchronous>, transform_indices = @transform_3, window_bounds = array<i64: 64, 128>}, {pipeline_mode = #tpu.pipeline_mode<synchronous>, transform_indices = @transform_4, window_bounds = array<i64: 1, 128>}, {pipeline_mode = #tpu.pipeline_mode<synchronous>, transform_indices = @transform_5, window_bounds = array<i64: 128, 256>}, {pipeline_mode = #tpu.pipeline_mode<synchronous>, transform_indices = @transform_6, window_bounds = array<i64: 1, 256>}, {transform_indices = @transform_7, window_bounds = array<i64: 8, 256>}]} {
    %c0 = arith.constant 0 : index
    %c0_0 = arith.constant 0 : index
    %0 = vector.load %arg1[%c0, %c0_0] : memref<8x32xbf16, #tpu.memory_space<vmem>>, vector<8x32xbf16>
    %c0_1 = arith.constant 0 : index
    %c0_2 = arith.constant 0 : index
    %1 = vector.load %arg2[%c0_1, %c0_2] : memref<32x64xbf16, #tpu.memory_space<vmem>>, vector<32x64xbf16>
    %cst = arith.constant dense<0.000000e+00> : vector<8x64xf32>
    %2 = tpu.matmul %0, %1, %cst {dimension_numbers = #tpu.dot_dimension_numbers<[1], [0], [0], [1], [0, 0, 1, 1], [], []>} : vector<8x32xbf16>, vector<32x64xbf16>, vector<8x64xf32> -> vector<8x64xf32>
    %c0_3 = arith.constant 0 : index
    %c0_4 = arith.constant 0 : index
    %3 = vector.load %arg3[%c0_3, %c0_4] : memref<1x64xf32, #tpu.memory_space<vmem>>, vector<1x64xf32>
    %4 = vector.broadcast %3 : vector<1x64xf32> to vector<8x64xf32>
    %5 = arith.addf %2, %4 : vector<8x64xf32>
    %cst_5 = arith.constant 0.000000e+00 : f32
    %6 = vector.broadcast %cst_5 : f32 to vector<8x64xf32>
    %7 = arith.maximumf %5, %6 : vector<8x64xf32>
    %8 = arith.truncf %7 : vector<8x64xf32> to vector<8x64xbf16>
    %c0_6 = arith.constant 0 : index
    %c0_7 = arith.constant 0 : index
    %9 = vector.load %arg4[%c0_6, %c0_7] : memref<64x128xbf16, #tpu.memory_space<vmem>>, vector<64x128xbf16>
    %cst_8 = arith.constant dense<0.000000e+00> : vector<8x128xf32>
    %10 = tpu.matmul %8, %9, %cst_8 {dimension_numbers = #tpu.dot_dimension_numbers<[1], [0], [0], [1], [0, 0, 1, 1], [], []>} : vector<8x64xbf16>, vector<64x128xbf16>, vector<8x128xf32> -> vector<8x128xf32>
    %c0_9 = arith.constant 0 : index
    %c0_10 = arith.constant 0 : index
    %11 = vector.load %arg5[%c0_9, %c0_10] : memref<1x128xf32, #tpu.memory_space<vmem>>, vector<1x128xf32>
    %12 = vector.broadcast %11 : vector<1x128xf32> to vector<8x128xf32>
    %13 = arith.addf %10, %12 : vector<8x128xf32>
    %cst_11 = arith.constant 0.000000e+00 : f32
    %14 = vector.broadcast %cst_11 : f32 to vector<8x128xf32>
    %15 = arith.maximumf %13, %14 : vector<8x128xf32>
    %16 = arith.truncf %15 : vector<8x128xf32> to vector<8x128xbf16>
    %c0_12 = arith.constant 0 : index
    %c0_13 = arith.constant 0 : index
    %17 = vector.load %arg6[%c0_12, %c0_13] : memref<128x256xbf16, #tpu.memory_space<vmem>>, vector<128x256xbf16>
    %cst_14 = arith.constant dense<0.000000e+00> : vector<8x256xf32>
    %18 = tpu.matmul %16, %17, %cst_14 {dimension_numbers = #tpu.dot_dimension_numbers<[1], [0], [0], [1], [0, 0, 1, 1], [], []>} : vector<8x128xbf16>, vector<128x256xbf16>, vector<8x256xf32> -> vector<8x256xf32>
    %c0_15 = arith.constant 0 : index
    %c0_16 = arith.constant 0 : index
    %19 = vector.load %arg7[%c0_15, %c0_16] : memref<1x256xf32, #tpu.memory_space<vmem>>, vector<1x256xf32>
    %20 = vector.broadcast %19 : vector<1x256xf32> to vector<8x256xf32>
    %21 = arith.addf %18, %20 : vector<8x256xf32>
    %22 = arith.negf %21 : vector<8x256xf32>
    %23 = math.exp %22 : vector<8x256xf32>
    %cst_17 = arith.constant 1.000000e+00 : f32
    %24 = vector.broadcast %cst_17 : f32 to vector<8x256xf32>
    %25 = arith.addf %24, %23 : vector<8x256xf32>
    %26 = arith.divf %24, %25 : vector<8x256xf32>
    %c0_18 = arith.constant 0 : index
    %c0_19 = arith.constant 0 : index
    %27 = vector.load %arg8[%c0_18, %c0_19] : memref<8x256xf32, #tpu.memory_space<vmem>>, vector<8x256xf32>
    tpu.vector_store %arg8[%c0_18, %c0_19], %26 {strides = array<i32>} : memref<8x256xf32, #tpu.memory_space<vmem>>, vector<8x256xf32>,
    return
  }
  func.func @transform_0(%arg0: i32) -> (i32, i32) {
    %c0_i32 = arith.constant 0 : i32
    %c0_i32_0 = arith.constant 0 : i32
    return %arg0, %c0_i32 : i32, i32
  }
  func.func @transform_1(%arg0: i32) -> (i32, i32) {
    %c0_i32 = arith.constant 0 : i32
    %c0_i32_0 = arith.constant 0 : i32
    %c0_i32_1 = arith.constant 0 : i32
    return %c0_i32, %c0_i32_0 : i32, i32
  }
  func.func @transform_2(%arg0: i32) -> (i32, i32) {
    %c0_i32 = arith.constant 0 : i32
    %c0_i32_0 = arith.constant 0 : i32
    %c0_i32_1 = arith.constant 0 : i32
    return %c0_i32, %c0_i32_0 : i32, i32
  }
  func.func @transform_3(%arg0: i32) -> (i32, i32) {
    %c0_i32 = arith.constant 0 : i32
    %c0_i32_0 = arith.constant 0 : i32
    %c0_i32_1 = arith.constant 0 : i32
    return %c0_i32, %c0_i32_0 : i32, i32
  }
  func.func @transform_4(%arg0: i32) -> (i32, i32) {
    %c0_i32 = arith.constant 0 : i32
    %c0_i32_0 = arith.constant 0 : i32
    %c0_i32_1 = arith.constant 0 : i32
    return %c0_i32, %c0_i32_0 : i32, i32
  }
  func.func @transform_5(%arg0: i32) -> (i32, i32) {
    %c0_i32 = arith.constant 0 : i32
    %c0_i32_0 = arith.constant 0 : i32
    %c0_i32_1 = arith.constant 0 : i32
    return %c0_i32, %c0_i32_0 : i32, i32
  }
  func.func @transform_6(%arg0: i32) -> (i32, i32) {
    %c0_i32 = arith.constant 0 : i32
    %c0_i32_0 = arith.constant 0 : i32
    %c0_i32_1 = arith.constant 0 : i32
    return %c0_i32, %c0_i32_0 : i32, i32
  }
  func.func @transform_7(%arg0: i32) -> (i32, i32) {
    %c0_i32 = arith.constant 0 : i32
    %c0_i32_0 = arith.constant 0 : i32
    return %arg0, %c0_i32 : i32, i32
  }
}

</mosaic_0001>

<bundles_post_ra>
// kernel: _decoder_apply.1
= control target key start
LH: loop header
LB: loop body
LE: loop exit
PB: predicated region body
PF: predicated region fallthrough
CT: control target
= control target key end

     0   :  { %12 = vsyncpa [#allocation3], 0  ;;  %s662_s0 = inlined_call_operand.vmem [shape: bf16[8,32], index: 0, kind: input, shape index: {}]   ;;  %s663_s1 = inlined_call_operand.hbm [shape: bf16[32,64], index: 1, kind: input, shape index: {}]   ;;  %s664_s2 = inlined_call_operand.vmem [shape: f32[1,64], index: 2, kind: input, shape index: {}]   ;;  %s665_s3 = inlined_call_operand.hbm [shape: bf16[64,128], index: 3, kind: input, shape index: {}]   ;;  %s666_s4 = inlined_call_operand.vmem [shape: f32[1,128], index: 4, kind: input, shape index: {}]   ;;  %s667_s5 = inlined_call_operand.hbm [shape: bf16[128,256], index: 5, kind: input, shape index: {}]   ;;  %s668_s6 = inlined_call_operand.vmem [shape: f32[1,256], index: 6, kind: input, shape index: {}]   ;;  %s669_s7 = inlined_call_operand.hbm [shape: f32[8,256], index: 7, kind: output, shape index: {}]  }
   0x1   :  { %13 = vsyncpa [#allocation6], 0 }
   0x2   :  { %14 = vsyncpa [#allocation4], 0  ;;  %s36_s26 = sshll.u32 %s665_s3, 4  ;;  %s590_s27 = smov [#allocation5]   ;;  %s37_s26 = int_to_ptr.hbm [resolvable:$true] %s36_s26 }
   0x3   :  { %s38_s28 = sshll.u32 %s590_s27, 4  ;;  %s21_s8 = sshll.u32 %s663_s1, 4  ;;  %s39_s28 = int_to_ptr.vmem [resolvable:$true] %s38_s28  ;;  %s22_s8 = int_to_ptr.hbm [resolvable:$true] %s21_s8 }
   0x4   :  { %s591_s9 = smov 64   ;;  %s592_s10 = smov 4  }
   0x5   :  { %44 = dma.hbm_to_vmem [thread:$0]  %s37_s26, 512, %s39_s28, [#allocation6], %s591_s9, %s591_s9, %s592_s10  }
   0x6   :  { %s593_s11 = smov [#allocation2]   ;;  %s51_s15 = sshll.u32 %s667_s5, 4  ;;  %s52_s15 = int_to_ptr.hbm [resolvable:$true] %s51_s15 }
   0x7   :  { %s23_s12 = sshll.u32 %s593_s11, 4  ;;  %s594_s3 = smov [#allocation7]   ;;  %s24_s12 = int_to_ptr.vmem [resolvable:$true] %s23_s12 }
   0x8   :  { %29 = dma.hbm_to_vmem [thread:$0]  %s22_s8, 256, %s24_s12, [#allocation3], %s591_s9, %s591_s9, %s592_s10  }
   0x9   :  { %s53_s16 = sshll.u32 %s594_s3, 4  ;;  %s595_s17 = smov 128   ;;  %s54_s16 = int_to_ptr.vmem [resolvable:$true] %s53_s16 }
   0xa   :  { %s596_s18 = smov 8  }
   0xb   :  { %59 = dma.hbm_to_vmem [thread:$0]  %s52_s15, 2048, %s54_s16, [#allocation6], %s595_s17, %s595_s17, %s596_s18  }
   0xc   :  { %584 = dma.done.wait [#allocation3], 256  }
   0xd   :  { %585 = vsyncadd [#allocation3], 4294967040 }
   0xe   :  { %586 = dma.done.wait [#allocation6], 2560  }
   0xf   :  { %587 = vsyncadd [#allocation6], 4294964736  ;;  %v449_v0 = vld [vmem:[#allocation2 + $0x8] sm:$0xff]  ;;  %v448_v2 = vld [vmem:[#allocation2] sm:$0xff]  ;;  %vm96_vm0 = vcmask 261120   ;;  %vm151_vm1 = vcmask 523264  }
  0x10   :  { %v453_v1 = vld [vmem:[#allocation5 + $0x18] sm:$0xff]  ;;  %106 = vmatpush.bf16.msra.mxu0 %v449_v0  ;;  %v452_v3 = vld [vmem:[#allocation5 + $0x10] sm:$0xff]  ;;  %v451_v5 = vld [vmem:[#allocation5 + $0x8] sm:$0xff]  ;;  %s345_s25 = sshll.u32 %s669_s7, 4  ;;  %s346_s25 = int_to_ptr.hbm [resolvable:$true] %s345_s25 }
  0x11   :  { %159 = vmatpush.bf16.msra.mxu1 %v453_v1  ;;  %v75_v4 = vld [vmem:[%s662_s0] sm:$0xf]  ;;  %v450_v6 = vld [vmem:[#allocation5] sm:$0xff]  ;;  %v469_v8 = vld [vmem:[#allocation7 + $0x74] sm:$0xf0] }
  0x12   :  { %v440_v7 = vld [vmem:[#allocation7 + $0x70] sm:$0xf]  ;;  %v468_v9 = vld [vmem:[#allocation7 + $0x74] sm:$0xf]  ;;  %v442_v11 = vld [vmem:[#allocation7 + $0x78] sm:$0xf0] }
  0x13   :  { %v441_v10 = vor.u32 %v469_v8, %v440_v7  ;;  %v432_v12 = vld [vmem:[#allocation7 + $0x60] sm:$0xf]  ;;  %v467_v13 = vld [vmem:[#allocation7 + $0x64] sm:$0xf0]  ;;  %v445_v14 = vor.u32 %v468_v9, %v442_v11  ;;  %v466_v15 = vld [vmem:[#allocation7 + $0x64] sm:$0xf] }
  0x14   :  { %107 = vmatpush.bf16.msra.mxu0 %v448_v2  ;;  %v434_v16 = vld [vmem:[#allocation7 + $0x68] sm:$0xf0]  ;;  %v433_v17 = vor.u32 %v467_v13, %v432_v12  ;;  %v424_v19 = vld [vmem:[#allocation7 + $0x50] sm:$0xf]  ;;  %v465_v20 = vld [vmem:[#allocation7 + $0x54] sm:$0xf0] }
  0x15   :  { %160 = vmatpush.bf16.msra.mxu1 %v452_v3  ;;  %272 = vmatpush.bf16.msra.mxu2 %v441_v10  ;;  %v437_v18 = vor.u32 %v466_v15, %v434_v16  ;;  %v464_v21 = vld [vmem:[#allocation7 + $0x54] sm:$0xf]  ;;  %v426_v22 = vld [vmem:[#allocation7 + $0x58] sm:$0xf0]  ;;  %v425_v23 = vor.u32 %v465_v20, %v424_v19  ;;  %v416_v25 = vld [vmem:[#allocation7 + $0x40] sm:$0xf] }
  0x16   :  { %285 = vmatpush.bf16.msra.mxu3 %v445_v14  ;;  %v429_v24 = vor.u32 %v464_v21, %v426_v22  ;;  %v463_v26 = vld [vmem:[#allocation7 + $0x44] sm:$0xf0]  ;;  %v462_v27 = vld [vmem:[#allocation7 + $0x44] sm:$0xf]  ;;  %v418_v28 = vld [vmem:[#allocation7 + $0x48] sm:$0xf0] }
  0x17   :  { %364 = vmatmul.msk.bf16.vlgmr.msra.gmra.mxu0 %vm96_vm0, %v75_v4  ;;  %v417_v29 = vor.u32 %v463_v26, %v416_v25  ;;  %v421_v30 = vor.u32 %v462_v27, %v418_v28  ;;  %v408_v31 = vld [vmem:[#allocation7 + $0x30] sm:$0xf]  ;;  %v461_v32 = vld [vmem:[#allocation7 + $0x34] sm:$0xf0]  ;;  %v460_v33 = vld [vmem:[#allocation7 + $0x34] sm:$0xf] }
  0x18   :  { %v410_v34 = vld [vmem:[#allocation7 + $0x38] sm:$0xf0]  ;;  %v409_v35 = vor.u32 %v461_v32, %v408_v31  ;;  %v400_v37 = vld [vmem:[#allocation7 + $0x20] sm:$0xf]  ;;  %v459_v38 = vld [vmem:[#allocation7 + $0x24] sm:$0xf0] }
  0x19   :  { %161 = vmatpush.bf16.msra.mxu1 %v451_v5  ;;  %273 = vmatpush.bf16.msra.mxu2 %v433_v17  ;;  %v413_v36 = vor.u32 %v460_v33, %v410_v34  ;;  %v458_v39 = vld [vmem:[#allocation7 + $0x24] sm:$0xf]  ;;  %v402_v40 = vld [vmem:[#allocation7 + $0x28] sm:$0xf0]  ;;  %v401_v41 = vor.u32 %v459_v38, %v400_v37  ;;  %v478_v43 = vld [vmem:[%s664_s2] ss:$0 sm:$0xff] }
  0x1a   :  { %286 = vmatpush.bf16.msra.mxu3 %v437_v18  ;;  %v405_v42 = vor.u32 %v458_v39, %v402_v40  ;;  %v392_v49 = vld [vmem:[#allocation7 + $0x10] sm:$0xf]  ;;  %v457_v50 = vld [vmem:[#allocation7 + $0x14] sm:$0xf0]  ;;  %v456_v51 = vld [vmem:[#allocation7 + $0x14] sm:$0xf] }
  0x1b   :  { %v393_v52 = vor.u32 %v457_v50, %v392_v49  ;;  %v394_v53 = vld [vmem:[#allocation7 + $0x18] sm:$0xf0]  ;;  %v384_v55 = vld [vmem:[#allocation7] sm:$0xf]  ;;  %v455_v56 = vld [vmem:[#allocation7 + $0x4] sm:$0xf0] }
  0x1c   :  { %v397_v54 = vor.u32 %v456_v51, %v394_v53  ;;  %v454_v57 = vld [vmem:[#allocation7 + $0x4] sm:$0xf]  ;;  %v385_v58 = vor.u32 %v455_v56, %v384_v55  ;;  %v386_v59 = vld [vmem:[#allocation7 + $0x8] sm:$0xf0]  ;;  %v479_v61 = vld [vmem:[%s666_s4] ss:$0 sm:$0xff] }
  0x1d   :  { %162 = vmatpush.bf16.msra.mxu1 %v450_v6  ;;  %274 = vmatpush.bf16.msra.mxu2 %v425_v23  ;;  %v389_v60 = vor.u32 %v454_v57, %v386_v59  ;;  %v186_v3 = vld [vmem:[%s668_s6] sm:$0x3]  ;;  %s597_s4 = smov [#allocation8]  }
  0x1e   :  { %287 = vmatpush.bf16.msra.mxu3 %v429_v24  ;;  %v188_v4 = vperm.slane %v186_v3, 0  ;;  %v189_v5 = vperm.slane %v186_v3, 1  ;;  %s343_s6 = sshll.u32 %s597_s4, 4  ;;  %s344_s6 = int_to_ptr.vmem [resolvable:$true] %s343_s6 }
  0x21   :  { %275 = vmatpush.bf16.msra.mxu2 %v417_v29 }
  0x22   :  { %288 = vmatpush.bf16.msra.mxu3 %v421_v30 }
  0x25   :  { %276 = vmatpush.bf16.msra.mxu2 %v409_v35 }
  0x26   :  { %289 = vmatpush.bf16.msra.mxu3 %v413_v36 }
  0x29   :  { %277 = vmatpush.bf16.msra.mxu2 %v401_v41 }
  0x2a   :  { %290 = vmatpush.bf16.msra.mxu3 %v405_v42 }
  0x2d   :  { %278 = vmatpush.bf16.msra.mxu2 %v393_v52 }
  0x2e   :  { %291 = vmatpush.bf16.msra.mxu3 %v397_v54 }
  0x31   :  { %279 = vmatpush.bf16.msra.mxu2 %v385_v58 }
  0x32   :  { %292 = vmatpush.bf16.msra.mxu3 %v389_v60 }
  0x94   :  { %v109_v44 = vpop.f32.mrf.mxu0 }
  0x95   :  { %v110_v45 = vadd.f32 %v478_v43, %v109_v44 }
  0x97   :  { %v113_v46 = vmax.f32 %v110_v45, 0.0 }
  0x99   :  { %v114_v47 = vpack.c.bf16 %v113_v46, %v113_v46 }
  0x9b   :  { %381 = vmatmul.msk.bf16.vlgmr.msra.gmra.mxu1 %vm151_vm1, %v114_v47 }
  0x9c   :  { %v111_v48 = vpop.f32.mrf.mxu0 }
 0x118   :  { %v164_v62 = vpop.f32.mrf.mxu1 }
 0x119   :  { %v165_v63 = vadd.f32 %v479_v61, %v164_v62 }
 0x11b   :  { %v168_v0 = vmax.f32 %v165_v63, 0.0 }
 0x11d   :  { %v169_v1 = vpack.c.bf16 %v168_v0, %v168_v0 }
 0x11f   :  { %280 = vmatmul.bf16.vlgmr.msra.gmra.mxu2 %v169_v1  ;;  %293 = vmatmul.bf16.vlgmr.msra.gmra.mxu3 %v169_v1 }
 0x120   :  { %v166_v2 = vpop.f32.mrf.mxu1 }
 0x1a2   :  { %v281_v6 = vpop.f32.mrf.mxu2  ;;  %v294_v7 = vpop.f32.mrf.mxu3 }
 0x1a3   :  { %v282_v8 = vadd.f32 %v281_v6, %v188_v4  ;;  %v295_v9 = vadd.f32 %v294_v7, %v189_v5 }
 0x1a5   :  { %v446_v10 = vmul.f32 -1.442695, %v282_v8  ;;  %v447_v11 = vmul.f32 -1.442695, %v295_v9 }
 0x1a7   :  { %480 = vpow2.f32 %v446_v10 }
 0x1a8   :  { %482 = vpow2.f32 %v447_v11 }
 0x1aa   :  { %v283_v12 = vpop.f32.mrf.mxu2  ;;  %v296_v13 = vpop.f32.mrf.mxu3 }
 0x1ad   :  { %v481_v14 = vpop.eup %480 }
 0x1ae   :  { %v483_v15 = vpop.eup %482  ;;  %v304_v16 = vadd.f32 1.0, %v481_v14 }
 0x1af   :  { %v305_v17 = vadd.f32 1.0, %v483_v15 }
 0x1b0   :  { %484 = vrcp.f32 %v304_v16  ;;  %v317_v24 = vand.u32 2147483648, %v304_v16  ;;  %v315_v26 = vand.u32 2147483647, %v304_v16  ;;  %vm311_vm4 = vweird.f32 %v304_v16 }
 0x1b1   :  { %486 = vrcp.f32 %v305_v17  ;;  %v332_v27 = vand.u32 2147483648, %v305_v17  ;;  %v330_v29 = vand.u32 2147483647, %v305_v17  ;;  %vm326_vm6 = vweird.f32 %v305_v17 }
 0x1b2   :  { %v318_v31 = vor.u32 1.1754944e-38, %v317_v24  ;;  %vm316_vm7 = vcmp.eq.f32.partialorder %v315_v26, 8.507059e+37 }
 0x1b3   :  { %v333_v34 = vor.u32 1.1754944e-38, %v332_v27  ;;  %vm331_vm9 = vcmp.eq.f32.partialorder %v330_v29, 8.507059e+37 }
 0x1b6   :  { %v485_v18 = vpop.eup %484 }
 0x1b7   :  { %v487_v19 = vpop.eup %486  ;;  %v307_v20 = vmul.f32 %v485_v18, %v304_v16  ;;  %vm312_vm2 = vweird.f32 %v485_v18 }
 0x1b8   :  { %v322_v21 = vmul.f32 %v487_v19, %v305_v17  ;;  %vm327_vm3 = vweird.f32 %v487_v19  ;;  %vm313_vm5 = vmor %vm311_vm4, %vm312_vm2 }
 0x1b9   :  { %v308_v22 = vsub.f32 1.0, %v307_v20  ;;  %vm328_vm8 = vmor %vm326_vm6, %vm327_vm3 }
 0x1ba   :  { %v323_v23 = vsub.f32 1.0, %v322_v21 }
 0x1bb   :  { %v309_v25 = vmul.f32 %v485_v18, %v308_v22 }
 0x1bc   :  { %v324_v28 = vmul.f32 %v487_v19, %v323_v23 }
 0x1bd   :  { %v310_v30 = vadd.f32 %v485_v18, %v309_v25 }
 0x1be   :  { %v325_v32 = vadd.f32 %v487_v19, %v324_v28 }
 0x1bf   :  { %v314_v33 = vsel %vm313_vm5, %v485_v18, %v310_v30 }
 0x1c0   :  { %v319_v35 = vsel %vm316_vm7, %v318_v31, %v314_v33  ;;  %v329_v36 = vsel %vm328_vm8, %v487_v19, %v325_v32 }
 0x1c1   :  { %v334_v37 = vsel %vm331_vm9, %v333_v34, %v329_v36  ;;  %336 = vst [vmem:[#allocation8] sm:$0xff] %v319_v35 }
 0x1c2   :  { %337 = vst [vmem:[#allocation8 + $0x8] sm:$0xff] %v334_v37 }
 0x1c3   :  { %348 = dma.vmem_to_hbm [thread:$0]  %s344_s6, 256, %s346_s25, [#allocation4]  }
 0x1c4   :  { %588 = dma.done.wait [#allocation4], 256  }
 0x1c5   :  { %589 = vsyncadd [#allocation4], 4294967040 }
 0x1c6   :  { %353 = vsyncpa [#allocation3], 1 }
 0x1c7   :  { %354 = vsyncpa [#allocation6], 1 }
 0x1c8   :  { %355 = vsyncpa [#allocation4], 1 }

</bundles_post_ra>
